<compile_context>
chip_gen: v7x
topology: tpu7x:2x2x1
jax: 0.10.0
libtpu: 0.0.40
codegen_flags: <defaults>
</compile_context>

<pallas_src>
import functools

import jax
import jax.numpy as jnp
from jax.experimental import pallas as pl
from jax.experimental.pallas import tpu as pltpu


def _round_up(v, m):
    return ((v + m - 1) // m) * m


# ----------------------------- Pallas kernel --------------------------------
def _combined_kernel(layout, adj_ref, x_ref, w_ref, b_ref, out_ref):
    """One grid step = TB graphs: GCN body + mean pool + MLP head."""
    tbn, f = x_ref.shape
    tb = layout["tile_b"]
    h_dim = layout["hidden"]
    e_red = layout["e_red"]
    e_dim = layout["e_dim"]
    out_pad = layout["out_pad"]
    o_w1, o_w2, o_w3, o_w4, o_pool = layout["w_offsets"]
    o_b1, o_b2, o_b3, o_b4 = layout["b_offsets"]

    bf16 = jnp.bfloat16
    f32 = jnp.float32

    adj = adj_ref[0]                                   # [TBN, TBN] bf16, block-diag
    x = x_ref[...]                                     # [TBN, F]   bf16

    # Ref-slice each weight (only the tiles each matmul needs get loaded).
    w1 = w_ref[o_w1:o_w1 + f, :h_dim]                  # bf16 [F, H]
    w2 = w_ref[o_w2:o_w2 + h_dim, :e_red]              # bf16 [H, E_red]
    w3 = w_ref[o_w3:o_w3 + e_red, :e_dim]              # bf16 [E_red, E]
    w4 = w_ref[o_w4:o_w4 + e_dim, :out_pad]            # bf16 [E, OUT_PAD]
    pool = w_ref[o_pool:o_pool + tb, :tbn]             # bf16 [TB, TBN] (1/N blocks)

    b1 = b_ref[o_b1:o_b1 + 1, :h_dim]                  # f32
    b2 = b_ref[o_b2:o_b2 + 1, :e_red]
    b3 = b_ref[o_b3:o_b3 + 1, :e_dim]
    b4 = b_ref[o_b4:o_b4 + 1, :out_pad]                # mass_shift already folded in

    # --- GCN layer 1: aggregate first (F < hidden => fewer MACs), then transform.
    h = jnp.dot(adj, x, preferred_element_type=f32)                    # [TBN, F]
    h = jnp.dot(h.astype(bf16), w1, preferred_element_type=f32) + b1   # [TBN, H]
    h = jnp.maximum(h, 0.0)

    # --- GCN layer 2: transform first (hidden > E_red), then aggregate.
    h = jnp.dot(h.astype(bf16), w2, preferred_element_type=f32)        # [TBN, E_red]
    h = jnp.dot(adj, h.astype(bf16), preferred_element_type=f32)       # [TBN, E_red]
    emb = jnp.maximum(h + b2, 0.0)

    # --- global mean pool routed through the MXU (precomputed 1/N pool matrix).
    pooled = jnp.dot(pool, emb.astype(bf16), preferred_element_type=f32)  # [TB, E_red]

    # --- MLP head (mass_shift folded into b4 by the wrapper).
    z = jnp.dot(pooled.astype(bf16), w3, preferred_element_type=f32) + b3
    z = jnp.maximum(z, 0.0)                                               # [TB, E]
    out_ref[...] = jnp.dot(z.astype(bf16), w4, preferred_element_type=f32) + b4


# ----------------------------- parameter packing -----------------------------
def pack_params(params, mass_shift, out_pad, tile_b, n_nodes):
    """Pack weights (bf16) + pool matrix and biases (f32) into two VMEM slabs."""
    w1, b1, w2, b2, w3, b3, w4, b4 = [jnp.asarray(p, jnp.float32) for p in params]
    e_dim = w3.shape[1]
    out_size = w4.shape[1]
    tbn = tile_b * n_nodes

    w4p = jnp.zeros((e_dim, out_pad), jnp.float32).at[:, :out_size].set(w4)
    # Block mean-pool matrix: row b has 1/N over graph b's node rows.
    pool = jnp.kron(jnp.eye(tile_b, dtype=jnp.float32),
                    jnp.full((1, n_nodes), 1.0 / n_nodes, jnp.float32))  # [TB, TBN]

    # ---- bf16 weight slab (row offsets on 16-sublane boundaries for bf16 packing)
    w_segs = [w1, w2, w3, w4p, pool]
    w_offsets, row = [], 0
    for s in w_segs:
        w_offsets.append(row)
        row += _round_up(s.shape[0], 16)
    w_rows = _round_up(row, 16)
    w_cols = _round_up(max(s.shape[1] for s in w_segs), 128)
    w_packed = jnp.zeros((w_rows, w_cols), jnp.float32)
    for off, s in zip(w_offsets, w_segs):
        w_packed = w_packed.at[off:off + s.shape[0], :s.shape[1]].set(s)
    w_packed = w_packed.astype(jnp.bfloat16)

    # ---- f32 bias slab (added to the f32 accumulator in-kernel)
    b4p = jnp.zeros((1, out_pad), jnp.float32).at[:, :out_size].set(
        b4 + jnp.float32(mass_shift))          # mass_shift only on real lanes
    b_segs = [b1, b2, b3, b4p]
    b_offsets, row = [], 0
    for s in b_segs:
        b_offsets.append(row)
        row += 8                               # keep each bias on its own 8-row band
    b_rows = _round_up(row, 8)
    b_cols = _round_up(max(s.shape[1] for s in b_segs), 128)
    b_packed = jnp.zeros((b_rows, b_cols), jnp.float32)
    for off, s in zip(b_offsets, b_segs):
        b_packed = b_packed.at[off:off + s.shape[0], :s.shape[1]].set(s)

    layout = dict(
        w_offsets=tuple(w_offsets),
        b_offsets=tuple(b_offsets),
        hidden=w1.shape[1],
        e_red=w2.shape[1],
        e_dim=e_dim,
        out_pad=out_pad,
        tile_b=tile_b,
    )
    return w_packed, b_packed, layout


# ----------------------------- wrapper ---------------------------------------
def combined_model_cnn_forward(adj, x, params, mass_shift, *, tile_b=8):
    """Fused batched forward: adj [B,N,N], x [B,N,F] -> out [B, output_size].

    tile_b: graphs per grid step. 8 (TB*N=128) suits v5e / dual-step v7x;
    16 (TB*N=256, grid=1) matches v6e's 256-wide MXU.
    """
    b, n, _ = adj.shape
    f = x.shape[-1]
    out_size = params[6].shape[1]
    out_pad = _round_up(max(out_size, 128), 128)
    assert b % tile_b == 0, "batch must be divisible by tile_b"
    tbn = tile_b * n
    assert tbn % 8 == 0
    g = b // tile_b

    w_packed, b_packed, layout = pack_params(params, mass_shift, out_pad, tile_b, n)
    h_dim, e_red, e_dim = layout["hidden"], layout["e_red"], layout["e_dim"]

    # Block-diagonal adjacency per batch tile, bf16 MXU operand.
    adj_g = adj.reshape(g, tile_b, n, n)
    eye_tb = jnp.eye(tile_b, dtype=adj.dtype)
    adj_blk = jnp.einsum("gbmn,bc->gbmcn", adj_g, eye_tb)
    adj_blk = adj_blk.reshape(g, tbn, tbn).astype(jnp.bfloat16)

    # Node features flattened graph-major, bf16 MXU operand.
    x2 = x.reshape(b * n, f).astype(jnp.bfloat16)

    flops_step = 2 * (tbn * tbn * f + tbn * f * h_dim + tbn * h_dim * e_red
                      + tbn * tbn * e_red + tile_b * tbn * e_red
                      + tile_b * e_red * e_dim + tile_b * e_dim * out_pad)
    bytes_accessed = (2 * (adj_blk.size + x2.size + w_packed.size)
                      + 4 * (b_packed.size + b * out_pad))
    cost = pl.CostEstimate(flops=g * flops_step, transcendentals=0,
                           bytes_accessed=bytes_accessed)

    out_padded = pl.pallas_call(
        functools.partial(_combined_kernel, layout),
        out_shape=jax.ShapeDtypeStruct((b, out_pad), jnp.float32),
        grid=(g,),
        in_specs=[
            pl.BlockSpec((1, tbn, tbn), lambda i: (i, 0, 0)),    # block-diag adj tile
            pl.BlockSpec((tbn, f), lambda i: (i, 0)),            # node features tile
            pl.BlockSpec(w_packed.shape, lambda i: (0, 0)),      # weights (resident)
            pl.BlockSpec(b_packed.shape, lambda i: (0, 0)),      # biases (resident)
        ],
        out_specs=pl.BlockSpec((tile_b, out_pad), lambda i: (i, 0)),
        compiler_params=pltpu.CompilerParams(
            dimension_semantics=("parallel",)),
        cost_estimate=cost,
    )(adj_blk, x2, w_packed, b_packed)

    return out_padded[:, :out_size]


# ----------------------------- references ------------------------------------
def reference_forward(adj, x, params, mass_shift):
    """Pure-f32 reference (original module semantics)."""
    w1, b1, w2, b2, w3, b3, w4, b4 = params
    h = jnp.einsum("bnf,fh->bnh", x, w1)
    h = jnp.einsum("bnm,bmh->bnh", adj, h) + b1
    h = jnp.maximum(h, 0.0)
    h = jnp.einsum("bnh,he->bne", h, w2)
    h = jnp.einsum("bnm,bme->bne", adj, h) + b2
    emb = jnp.maximum(h, 0.0)
    pooled = jnp.mean(emb, axis=1)
    z = jnp.maximum(pooled @ w3 + b3, 0.0)
    return z @ w4 + b4 + mass_shift


def reference_forward_mixed(adj, x, params, mass_shift):
    """Same math, but matmul operands rounded to bf16 with f32 accumulation,
    mirroring the kernel's MXU precision and op order."""
    w1, b1, w2, b2, w3, b3, w4, b4 = params
    bf = lambda a: a.astype(jnp.bfloat16)
    dot = functools.partial(jnp.einsum, preferred_element_type=jnp.float32)
    h = dot("bnm,bmf->bnf", bf(adj), bf(x))                  # aggregate first
    h = jnp.maximum(dot("bnf,fh->bnh", bf(h), bf(w1)) + b1, 0.0)
    h = dot("bnh,he->bne", bf(h), bf(w2))                    # transform first
    h = dot("bnm,bme->bne", bf(adj), bf(h))
    emb = jnp.maximum(h + b2, 0.0)
    pooled = jnp.mean(bf(emb).astype(jnp.float32), axis=1)
    z = jnp.maximum(dot("be,eh->bh", bf(pooled), bf(w3)) + b3, 0.0)
    return dot("bh,ho->bo", bf(z), bf(w4)) + b4 + mass_shift


# ----------------------------- parameter setup -------------------------------
def init_params(key, node_features, embedding_size_reduced, embedding_size,
                output_size, hidden=32):
    ks = jax.random.split(key, 8)
    scale = 0.1
    w1 = scale * jax.random.normal(ks[0], (node_features, hidden), jnp.float32)
    b1 = scale * jax.random.normal(ks[1], (1, hidden), jnp.float32)
    w2 = scale * jax.random.normal(ks[2], (hidden, embedding_size_reduced), jnp.float32)
    b2 = scale * jax.random.normal(ks[3], (1, embedding_size_reduced), jnp.float32)
    w3 = scale * jax.random.normal(ks[4], (embedding_size_reduced, embedding_size), jnp.float32)
    b3 = scale * jax.random.normal(ks[5], (1, embedding_size), jnp.float32)
    w4 = scale * jax.random.normal(ks[6], (embedding_size, output_size), jnp.float32)
    b4 = scale * jax.random.normal(ks[7], (1, output_size), jnp.float32)
    return (w1, b1, w2, b2, w3, b3, w4, b4)


def make_normalized_adj(key, batch, n_nodes):
    """Batched random symmetric adjacency + self loops, D^-1/2 A D^-1/2."""
    a = (jax.random.uniform(key, (batch, n_nodes, n_nodes)) > 0.7).astype(jnp.float32)
    a = jnp.maximum(a, jnp.swapaxes(a, -1, -2))
    a = a + jnp.eye(n_nodes, dtype=jnp.float32)[None]
    d = jnp.sum(a, axis=-1)
    d_inv_sqrt = 1.0 / jnp.sqrt(d)
    return a * d_inv_sqrt[..., :, None] * d_inv_sqrt[..., None, :]


# ----------------------------------- main ------------------------------------
if __name__ == "__main__":
    key = jax.random.PRNGKey(0)
    k_adj, k_x, k_p = jax.random.split(key, 3)

    batch = 16
    n_nodes = 16
    node_features = 8
    embedding_size_reduced = 16
    embedding_size = 32
    output_size = 16
    mass_shift = 1.5

    adj = make_normalized_adj(k_adj, batch, n_nodes)                          # [B, N, N]
    x = jax.random.normal(k_x, (batch, n_nodes, node_features), jnp.float32)  # [B, N, F]
    params = init_params(k_p, node_features, embedding_size_reduced,
                         embedding_size, output_size)

    out = combined_model_cnn_forward(adj, x, params, mass_shift, tile_b=8)
    out = jax.block_until_ready(out)

    ref_mixed = reference_forward_mixed(adj, x, params, mass_shift)
    ref_f32 = reference_forward(adj, x, params, mass_shift)

    assert out.shape == (batch, output_size)
    assert jnp.all(jnp.isfinite(out))
    # Tight check vs a precision-matched (bf16-operand / f32-accumulate) reference.
    assert jnp.allclose(out, ref_mixed, atol=1e-3, rtol=1e-3), \
        float(jnp.max(jnp.abs(out - ref_mixed)))
    # Sanity check vs the pure-f32 module semantics (bf16 MXU inputs perturb slightly).
    assert jnp.allclose(out, ref_f32, atol=3e-2, rtol=3e-2), \
        float(jnp.max(jnp.abs(out - ref_f32)))
    print("KERNEL_OK")
</pallas_src>

<mosaic_0001>
module attributes {stable_mosaic.version = 11 : i64} {
  func.func @_combined_kernel(%arg0: i32, %arg1: memref<1x128x128xbf16, #tpu.memory_space<vmem>>, %arg2: memref<128x8xbf16, #tpu.memory_space<vmem>>, %arg3: memref<112x128xbf16, #tpu.memory_space<vmem>>, %arg4: memref<32x128xf32, #tpu.memory_space<vmem>>, %arg5: memref<8x128xf32, #tpu.memory_space<vmem>>) attributes {dimension_semantics = [#tpu.dimension_semantics<parallel>], iteration_bounds = array<i64: 2>, scalar_prefetch = 0 : i64, scratch_operands = 0 : i64, tpu.core_type = #tpu.core_type<tc>, window_params = [{transform_indices = @transform_0, window_bounds = array<i64: 1, 128, 128>}, {transform_indices = @transform_1, window_bounds = array<i64: 128, 8>}, {pipeline_mode = #tpu.pipeline_mode<synchronous>, transform_indices = @transform_2, window_bounds = array<i64: 112, 128>}, {pipeline_mode = #tpu.pipeline_mode<synchronous>, transform_indices = @transform_3, window_bounds = array<i64: 32, 128>}, {transform_indices = @transform_4, window_bounds = array<i64: 8, 128>}]} {
    %c0 = arith.constant 0 : index
    %c0_0 = arith.constant 0 : index
    %c0_1 = arith.constant 0 : index
    %0 = vector.load %arg1[%c0, %c0_0, %c0_1] : memref<1x128x128xbf16, #tpu.memory_space<vmem>>, vector<1x128x128xbf16>
    %1 = vector.shape_cast %0 : vector<1x128x128xbf16> to vector<128x128xbf16>
    %c0_2 = arith.constant 0 : index
    %c0_3 = arith.constant 0 : index
    %2 = vector.load %arg2[%c0_2, %c0_3] : memref<128x8xbf16, #tpu.memory_space<vmem>>, vector<128x8xbf16>
    %c0_4 = arith.constant 0 : index
    %c0_5 = arith.constant 0 : index
    %3 = vector.load %arg3[%c0_4, %c0_5] : memref<112x128xbf16, #tpu.memory_space<vmem>>, vector<8x32xbf16>
    %c16 = arith.constant 16 : index
    %c0_6 = arith.constant 0 : index
    %4 = vector.load %arg3[%c16, %c0_6] : memref<112x128xbf16, #tpu.memory_space<vmem>>, vector<32x16xbf16>
    %c48 = arith.constant 48 : index
    %c0_7 = arith.constant 0 : index
    %5 = vector.load %arg3[%c48, %c0_7] : memref<112x128xbf16, #tpu.memory_space<vmem>>, vector<16x32xbf16>
    %c64 = arith.constant 64 : index
    %c0_8 = arith.constant 0 : index
    %6 = vector.load %arg3[%c64, %c0_8] : memref<112x128xbf16, #tpu.memory_space<vmem>>, vector<32x128xbf16>
    %c96 = arith.constant 96 : index
    %c0_9 = arith.constant 0 : index
    %7 = vector.load %arg3[%c96, %c0_9] : memref<112x128xbf16, #tpu.memory_space<vmem>>, vector<8x128xbf16>
    %c0_10 = arith.constant 0 : index
    %c0_11 = arith.constant 0 : index
    %8 = vector.load %arg4[%c0_10, %c0_11] : memref<32x128xf32, #tpu.memory_space<vmem>>, vector<1x32xf32>
    %c8 = arith.constant 8 : index
    %c0_12 = arith.constant 0 : index
    %9 = vector.load %arg4[%c8, %c0_12] : memref<32x128xf32, #tpu.memory_space<vmem>>, vector<1x16xf32>
    %c16_13 = arith.constant 16 : index
    %c0_14 = arith.constant 0 : index
    %10 = vector.load %arg4[%c16_13, %c0_14] : memref<32x128xf32, #tpu.memory_space<vmem>>, vector<1x32xf32>
    %c24 = arith.constant 24 : index
    %c0_15 = arith.constant 0 : index
    %11 = vector.load %arg4[%c24, %c0_15] : memref<32x128xf32, #tpu.memory_space<vmem>>, vector<1x128xf32>
    %cst = arith.constant dense<0.000000e+00> : vector<128x8xf32>
    %12 = tpu.matmul %1, %2, %cst {dimension_numbers = #tpu.dot_dimension_numbers<[1], [0], [0], [1], [0, 0, 1, 1], [], []>} : vector<128x128xbf16>, vector<128x8xbf16>, vector<128x8xf32> -> vector<128x8xf32>
    %13 = arith.truncf %12 : vector<128x8xf32> to vector<128x8xbf16>
    %cst_16 = arith.constant dense<0.000000e+00> : vector<128x32xf32>
    %14 = tpu.matmul %13, %3, %cst_16 {dimension_numbers = #tpu.dot_dimension_numbers<[1], [0], [0], [1], [0, 0, 1, 1], [], []>} : vector<128x8xbf16>, vector<8x32xbf16>, vector<128x32xf32> -> vector<128x32xf32>
    %15 = vector.broadcast %8 : vector<1x32xf32> to vector<128x32xf32>
    %16 = arith.addf %14, %15 : vector<128x32xf32>
    %cst_17 = arith.constant 0.000000e+00 : f32
    %17 = vector.broadcast %cst_17 : f32 to vector<128x32xf32>
    %18 = arith.maximumf %16, %17 : vector<128x32xf32>
    %19 = arith.truncf %18 : vector<128x32xf32> to vector<128x32xbf16>
    %cst_18 = arith.constant dense<0.000000e+00> : vector<128x16xf32>
    %20 = tpu.matmul %19, %4, %cst_18 {dimension_numbers = #tpu.dot_dimension_numbers<[1], [0], [0], [1], [0, 0, 1, 1], [], []>} : vector<128x32xbf16>, vector<32x16xbf16>, vector<128x16xf32> -> vector<128x16xf32>
    %21 = arith.truncf %20 : vector<128x16xf32> to vector<128x16xbf16>
    %cst_19 = arith.constant dense<0.000000e+00> : vector<128x16xf32>
    %22 = tpu.matmul %1, %21, %cst_19 {dimension_numbers = #tpu.dot_dimension_numbers<[1], [0], [0], [1], [0, 0, 1, 1], [], []>} : vector<128x128xbf16>, vector<128x16xbf16>, vector<128x16xf32> -> vector<128x16xf32>
    %23 = vector.broadcast %9 : vector<1x16xf32> to vector<128x16xf32>
    %24 = arith.addf %22, %23 : vector<128x16xf32>
    %cst_20 = arith.constant 0.000000e+00 : f32
    %25 = vector.broadcast %cst_20 : f32 to vector<128x16xf32>
    %26 = arith.maximumf %24, %25 : vector<128x16xf32>
    %27 = arith.truncf %26 : vector<128x16xf32> to vector<128x16xbf16>
    %cst_21 = arith.constant dense<0.000000e+00> : vector<8x16xf32>
    %28 = tpu.matmul %7, %27, %cst_21 {dimension_numbers = #tpu.dot_dimension_numbers<[1], [0], [0], [1], [0, 0, 1, 1], [], []>} : vector<8x128xbf16>, vector<128x16xbf16>, vector<8x16xf32> -> vector<8x16xf32>
    %29 = arith.truncf %28 : vector<8x16xf32> to vector<8x16xbf16>
    %cst_22 = arith.constant dense<0.000000e+00> : vector<8x32xf32>
    %30 = tpu.matmul %29, %5, %cst_22 {dimension_numbers = #tpu.dot_dimension_numbers<[1], [0], [0], [1], [0, 0, 1, 1], [], []>} : vector<8x16xbf16>, vector<16x32xbf16>, vector<8x32xf32> -> vector<8x32xf32>
    %31 = vector.broadcast %10 : vector<1x32xf32> to vector<8x32xf32>
    %32 = arith.addf %30, %31 : vector<8x32xf32>
    %cst_23 = arith.constant 0.000000e+00 : f32
    %33 = vector.broadcast %cst_23 : f32 to vector<8x32xf32>
    %34 = arith.maximumf %32, %33 : vector<8x32xf32>
    %35 = arith.truncf %34 : vector<8x32xf32> to vector<8x32xbf16>
    %cst_24 = arith.constant dense<0.000000e+00> : vector<8x128xf32>
    %36 = tpu.matmul %35, %6, %cst_24 {dimension_numbers = #tpu.dot_dimension_numbers<[1], [0], [0], [1], [0, 0, 1, 1], [], []>} : vector<8x32xbf16>, vector<32x128xbf16>, vector<8x128xf32> -> vector<8x128xf32>
    %37 = vector.broadcast %11 : vector<1x128xf32> to vector<8x128xf32>
    %38 = arith.addf %36, %37 : vector<8x128xf32>
    %c0_25 = arith.constant 0 : index
    %c0_26 = arith.constant 0 : index
    %39 = vector.load %arg5[%c0_25, %c0_26] : memref<8x128xf32, #tpu.memory_space<vmem>>, vector<8x128xf32>
    tpu.vector_store %arg5[%c0_25, %c0_26], %38 {strides = array<i32>} : memref<8x128xf32, #tpu.memory_space<vmem>>, vector<8x128xf32>,
    return
  }
  func.func @transform_0(%arg0: i32) -> (i32, i32, i32) {
    %c0_i32 = arith.constant 0 : i32
    %c0_i32_0 = arith.constant 0 : i32
    %c0_i32_1 = arith.constant 0 : i32
    return %arg0, %c0_i32, %c0_i32_0 : i32, i32, i32
  }
  func.func @transform_1(%arg0: i32) -> (i32, i32) {
    %c0_i32 = arith.constant 0 : i32
    %c0_i32_0 = arith.constant 0 : i32
    return %arg0, %c0_i32 : i32, i32
  }
  func.func @transform_2(%arg0: i32) -> (i32, i32) {
    %c0_i32 = arith.constant 0 : i32
    %c0_i32_0 = arith.constant 0 : i32
    %c0_i32_1 = arith.constant 0 : i32
    return %c0_i32, %c0_i32_0 : i32, i32
  }
  func.func @transform_3(%arg0: i32) -> (i32, i32) {
    %c0_i32 = arith.constant 0 : i32
    %c0_i32_0 = arith.constant 0 : i32
    %c0_i32_1 = arith.constant 0 : i32
    return %c0_i32, %c0_i32_0 : i32, i32
  }
  func.func @transform_4(%arg0: i32) -> (i32, i32) {
    %c0_i32 = arith.constant 0 : i32
    %c0_i32_0 = arith.constant 0 : i32
    return %arg0, %c0_i32 : i32, i32
  }
}

</mosaic_0001>

<bundles_post_ra>
// kernel: tpu_custom_call.1
= control target key start
LH: loop header
LB: loop body
LE: loop exit
PB: predicated region body
PF: predicated region fallthrough
CT: control target
= control target key end

     0   :  { %9 = vsyncpa [#allocation3], 0  ;;  %s1943_s0 = inlined_call_operand.vmem [shape: bf16[2,128,128], index: 0, kind: input, shape index: {}]   ;;  %s1944_s1 = inlined_call_operand.vmem [shape: bf16[256,8], index: 1, kind: input, shape index: {}]   ;;  %s1945_s2 = inlined_call_operand.hbm [shape: bf16[112,128], index: 2, kind: input, shape index: {}]   ;;  %s1946_s3 = inlined_call_operand.hbm [shape: f32[32,128], index: 3, kind: input, shape index: {}]   ;;  %s1947_s4 = inlined_call_operand.hbm [shape: f32[16,128], index: 4, kind: output, shape index: {}]  }
   0x1   :  { %10 = vsyncpa [#allocation6], 0 }
   0x2   :  { %11 = vsyncpa [#allocation4], 0 }
   0x3   :  { %13 = vsyncpa [#allocation4 + $0x1], 0  ;;  %s1695_s15 = smov 0   ;;  %s1697_s16 = smov 0  }
   0x4   :  { %s1699_s17 = smov 0   ;;  %s1701_s18 = smov 0  }
   0x5 LB: > { %s1716_s19 = sadd.s32 4294967295, %s1659_s18   ;;  %s1183_s20 = sadd.s32 4294967294, %s1659_s18   ;;  %s1659_s18 = sphi %s1701_s18, %s1965_s18   ;;  %s1655_s17 = sphi %s1699_s17, %s1964_s17   ;;  %s1651_s16 = sphi %s1697_s16, %s1963_s16   ;;  %s1647_s15 = sphi %s1695_s15, %s1962_s15  }
   0x6   : > { %s1720_s21 = sadd.s32 1, %s1659_s18   ;;  %s120_s22 = sadd.s32 1, %s1655_s17 }
   0x7   : > { %s117_s23 = ssub.s32 %s1659_s18, %s1720_s21  ;;  %p130_p0 = scmp.ne.s32.totalorder %s1655_s17, %s1651_s16 }
   0x8   : > { %p118_p1 = scmp.eq.s32.totalorder %s117_s23, 0  ;;  %p131_p2 = scmp.eq.s32.totalorder %s1716_s19, 1 }
   0x9   : > { %p136_p3 = scmp.ne.s32.totalorder %s1651_s16, %s1647_s15  ;;  %p137_p4 = scmp.eq.s32.totalorder %s1183_s20, 1 }
   0xa   : > { %s1731_s24 = scalar_select %p118_p1, %s1655_s17, %s120_s22  }
   0xb   : > { %p1733_p5 = por %p131_p2, %p130_p0  ;;  %p1737_p6 = por %p137_p4, %p136_p3 }
   0xc   : > { %p1184_p7 = scmp.ge.s32.totalorder %s1659_s18, 1  ;;  %p144_p8 = scmp.lt.s32.totalorder %s1659_s18, 3 }
   0xd   : > { %s1951_s25 = scalar_select %p1733_p5, 1, 0 }
   0xe   : > { %s1952_s26 = scalar_select %p1737_p6, 1, 0 }
   0xf   : > { %p1948_p9 = scmp.eq.s32.totalorder %s1716_s19, 0  ;;  %p1744_p10 = pnand %p1184_p7, %p144_p8 }
  0x10   : > { %s1661_s28 = smov [#allocation2]   ;;  %s1662_s5 = smov [#allocation5]  }
  0x11   : > { %s1953_s27 = scalar_select %p1744_p10, 1, 0 }
  0x12   : > { %s156_s29 = sshll.u32 %s1661_s28, 4  ;;  %p1456_p11 = pneg %p1744_p10  ;;  %s157_s29 = int_to_ptr.vmem [resolvable:$true] %s156_s29 }
  0x13   : > { %s169_s6 = sshll.u32 %s1662_s5, 4  ;;  %s1533_s9 = scalar_lea.hbm %s1945_s2, 896  ;;  %s1756_s6 = int_to_ptr.vmem [resolvable:$true] %s169_s6 }
  0x14   : > { %p1752_p12 = pnand %p1948_p9, %p1456_p11  ;;  %p1534_p13 = scmp.ne.s32.totalorder %s1945_s2, %s1533_s9 }
  0x15   : > { %p1540_p3 = scmp.lt.u32.totalorder %s1533_s9, %s1945_s2 }
  0x16   : > { %p1535_p0 = pneg %p1752_p12 }
  0x18   : > { %p1536_p1 = pnand %p1535_p0, %p1534_p13 }
  0x1a   : > { %p1537_p2 = pneg %p1536_p1 }
  0x1c   : > { %p1542_p4 = pnand %p1540_p3, %p1537_p2 }
  0x1e   : > { %1545 = shalt.err (!%p1542_p4)
}
  0x1f   : > { %s1546_s14 = scalar_lea.vmem %s157_s29, 896  ;;  %p1554_p9 = scmp.lt.s32.totalorder %s157_s29, %s157_s29 }
  0x20   : > { %p1547_p7 = scmp.ne.s32.totalorder %s157_s29, %s1546_s14  ;;  %p1555_p6 = scmp.lt.s32.totalorder %s1546_s14, %s1546_s14 }
  0x22   : > { %p1549_p8 = pnand %p1547_p7, %p1535_p0  ;;  %p1556_p5 = por %p1555_p6, %p1554_p9 }
  0x24   : > { %p1550_p11 = pneg %p1549_p8 }
  0x26   : > { %p1557_p10 = pnand %p1556_p5, %p1550_p11 }
  0x28   : > { %1560 = shalt.err (!%p1557_p10)
}
  0x29   : > { %s1663_s20 = smov 64   ;;  %s1664_s22 = smov 4  }
  0x2a   : > { %1459 = dma.hbm_to_vmem [thread:$0]  (!%p1752_p12), %s1945_s2, 896, %s157_s29, [#allocation3], %s1663_s20, %s1663_s20, %s1664_s22  }
  0x2b   : > { %s1561_s8 = scalar_lea.hbm %s1946_s3, 512 }
  0x2c   : > { %p1562_p13 = scmp.ne.s32.totalorder %s1946_s3, %s1561_s8  ;;  %p1568_p9 = scmp.lt.u32.totalorder %s1561_s8, %s1946_s3 }
  0x2e   : > { %p1564_p5 = pnand %p1562_p13, %p1535_p0 }
  0x30   : > { %p1565_p6 = pneg %p1564_p5 }
  0x32   : > { %p1570_p10 = pnand %p1568_p9, %p1565_p6 }
  0x34   : > { %1573 = shalt.err (!%p1570_p10)
}
  0x35   : > { %s1574_s29 = scalar_lea.vmem %s1756_s6, 512  ;;  %p1582_p4 = scmp.lt.s32.totalorder %s1756_s6, %s1756_s6 }
  0x36   : > { %p1575_p1 = scmp.ne.s32.totalorder %s1756_s6, %s1574_s29  ;;  %p1583_p7 = scmp.lt.s32.totalorder %s1574_s29, %s1574_s29 }
  0x38   : > { %p1577_p2 = pnand %p1575_p1, %p1535_p0  ;;  %p1584_p8 = por %p1583_p7, %p1582_p4 }
  0x3a   : > { %p1578_p3 = pneg %p1577_p2 }
  0x3c   : > { %p1585_p11 = pnand %p1584_p8, %p1578_p3 }
  0x3e   : > { %1588 = shalt.err (!%p1585_p11)
}
  0x3f   : > { %s1665_s13 = smov 128   ;;  %s1666_s14 = smov 8  }
  0x40   : > { %1462 = dma.hbm_to_vmem [thread:$0]  (!%p1752_p12), %s1946_s3, 512, %s1756_s6, [#allocation6], %s1665_s13, %s1665_s13, %s1666_s14  }
  0x41   : > { %p1955_p13 = scmp.ne.s32.totalorder %s1953_s27, 0 }
  0x42   : > { %p1956_p0 = scmp.eq.s32.totalorder (!%p1955_p13), %s1716_s19, 0 }
  0x43   : > { %202 = sbr.rel (%p1955_p13) target bundleno = 1718 (0x6b6), region = 36 }
  0x4a   : > { %1634 = dma.done.wait (%p1956_p0), [#allocation3], 896   ;;  %p1957_p5 = pmov %p1956_p0 }
  0x4b   : > { %p1958_p6 = pmov %p1956_p0 }
  0x4c   : > { %1636 = vsyncadd (%p1957_p5), [#allocation3], 4294966400 }
  0x4d   : > { %1638 = dma.done.wait (%p1958_p6), [#allocation6], 512   ;;  %p1959_p9 = pmov %p1956_p0 }
  0x4e   : > { %s1194_s30 = sshll.u32 %s1716_s19, 4  ;;  %p237_p12 = scmp.lt.s32.totalorder %s1716_s19, 1  ;;  %v281_v16 = vld [vmem:[#allocation2] sm:$0xf]  ;;  %vm527_vm0 = vcmask 1043456   ;;  %v1528_v18 = vld [vmem:[#allocation2 + $0x8] sm:$0xff]  }
  0x4f   : > { %1640 = vsyncadd (%p1959_p9), [#allocation6], 4294966784  ;;  %p243_p10 = scmp.lt.s32.totalorder %s1194_s30, 31  ;;  %1445 = vmatprep.subr.msk.bf16.mxu1 %vm527_vm0, %v281_v16  ;;  %v529_v17 = vsel %vm527_vm0, %v281_v16, 0  ;;  %vm502_vm1 = vcmask 64512   ;;  %v1529_v25 = vld [vmem:[#allocation2 + $0x10] sm:$0xff]  }
  0x50   : > { %s238_s27 = scalar_select %p237_p12, %s1716_s19, 1  ;;  %1342 = vmatpush3.bf16.msra.mxu1 %v529_v17  ;;  %v1212_v44 = vld [vmem:[#allocation5] ss:$0 sm:$0xff]  ;;  %vm664_vm2 = vcmask 261120   ;;  %vm1668_vm3 = vmmov 0   ;;  %vm970_vm4 = vcmask 130048  }
  0x51   : > { %s1967_s30 = smov (!%p243_p10, %s1194_s30), 31  ;;  %1359 = vmatprep.subr.bf16.mxu1 %v1528_v18  ;;  %s234_s11 = sand.u32 1, %s1651_s16  }
  0x52   : > { %s1195_s6 = sshll.u32 %s1967_s30, 2  ;;  %s1243_s7 = sshll.u32 %s238_s27, 6 }
  0x53   : > { %s246_s5 = scalar_lea.vmem %s1944_s1, %s1195_s6  ;;  %s1824_s10 = scalar_lea.vmem %s1943_s0, %s1243_s7 }
  0x54   : > { %v1512_v0 = vld [vmem:[%s246_s5] sm:$0xff]   ;;  %v1513_v1 = vld [vmem:[%s246_s5 + $0x8] sm:$0xff]   ;;  %v1514_v2 = vld [vmem:[%s246_s5 + $0x10] sm:$0xff]   ;;  %s1191_s12 = sshll.u32 %s234_s11, 3  ;;  %s1240_s29 = sshll.u32 %s1716_s19, 7 }
  0x55   : > { %1309 = vmatprep.subr.bf16.mxu0 %v1512_v0  ;;  %v1515_v3 = vld [vmem:[%s246_s5 + $0x18] sm:$0xff]   ;;  %v1520_v4 = vld [vmem:[%s1824_s10] sm:$0xff]   ;;  %v1517_v6 = vld [vmem:[%s246_s5 + $0x28] sm:$0xff]   ;;  %s236_s13 = scalar_lea.vmem [#allocation7], %s1191_s12  ;;  %s1901_s30 = scalar_lea.hbm %s1947_s4, %s1240_s29 }
  0x56   : > { %1310 = vmatpush3.bf16.msra.mxu0 %v1512_v0  ;;  %1325 = vmatprep.mubr.bf16.mxu0 %v1520_v4  ;;  %v1516_v5 = vld [vmem:[%s246_s5 + $0x20] sm:$0xff]   ;;  %v1518_v7 = vld [vmem:[%s246_s5 + $0x30] sm:$0xff]   ;;  %v1519_v8 = vld [vmem:[%s246_s5 + $0x38] sm:$0xff]   ;;  %s1090_s14 = sshll.u32 %s236_s13, 4  ;;  %s1077_s27 = scalar_lea.sflag [#allocation4], %s234_s11  ;;  %s1903_s14 = int_to_ptr.vmem [resolvable:$true] %s1090_s14 }
  0x57   : > { %1311 = vmatprep.subr.bf16.mxu0 %v1513_v1  ;;  %v1828_v9 = vld [vmem:[%s1824_s10 + $0x8] sm:$0xff]   ;;  %v1831_v10 = vld [vmem:[%s1824_s10 + $0x10] sm:$0xff]   ;;  %v1836_v11 = vld [vmem:[%s1824_s10 + $0x18] sm:$0xff]   ;;  %s1589_s19 = scalar_lea.vmem %s1903_s14, 128  ;;  %p1960_p2 = scmp.ne.s32.totalorder %s1951_s25, 0 }
  0x58   : > { %v1839_v12 = vld [vmem:[%s1824_s10 + $0x20] sm:$0xff]   ;;  %v1844_v13 = vld [vmem:[%s1824_s10 + $0x28] sm:$0xff]   ;;  %v1847_v14 = vld [vmem:[%s1824_s10 + $0x30] sm:$0xff]   ;;  %p1590_p1 = scmp.ne.s32.totalorder %s1903_s14, %s1589_s19  ;;  %s1669_s6 = smov [#allocation7]  }
  0x59   : > { %v1852_v15 = vld [vmem:[%s1824_s10 + $0x38] sm:$0xff]   ;;  %s1593_s23 = sshll.u32 %s1669_s6, 4  ;;  %s1594_s23 = int_to_ptr.vmem [resolvable:$false] %s1593_s23 }
  0x5a   : > { %1312 = vmatpush3.bf16.msra.mxu0 %v1513_v1  ;;  %p1591_p3 = pnand %p1590_p1, %p1960_p2  ;;  %s1595_s28 = scalar_lea.vmem %s1594_s23, 256 }
  0x5b   : > { %1313 = vmatprep.subr.bf16.mxu0 %v1514_v2  ;;  %p1596_p7 = scmp.lt.s32.totalorder %s1903_s14, %s1594_s23  ;;  %p1597_p8 = scmp.lt.s32.totalorder %s1595_s28, %s1589_s19 }
  0x5c   : > { %p1592_p4 = pneg %p1591_p3 }
  0x5d   : > { %p1598_p11 = por %p1597_p8, %p1596_p7 }
  0x5e   : > { %1314 = vmatpush3.bf16.msra.mxu0 %v1514_v2 }
  0x5f   : > { %1315 = vmatprep.subr.bf16.mxu0 %v1515_v3  ;;  %p1599_p13 = pnand %p1598_p11, %p1592_p4 }
  0x62   : > { %1316 = vmatpush3.bf16.msra.mxu0 %v1515_v3 }
  0x63   : > { %1317 = vmatprep.subr.bf16.mxu0 %v1516_v5 }
  0x66   : > { %1318 = vmatpush3.bf16.msra.mxu0 %v1516_v5 }
  0x67   : > { %1319 = vmatprep.subr.bf16.mxu0 %v1517_v6 }
  0x6a   : > { %1320 = vmatpush3.bf16.msra.mxu0 %v1517_v6 }
  0x6b   : > { %1321 = vmatprep.subr.bf16.mxu0 %v1518_v7 }
  0x6e   : > { %1322 = vmatpush3.bf16.msra.mxu0 %v1518_v7 }
  0x6f   : > { %1323 = vmatprep.subr.bf16.mxu0 %v1519_v8 }
  0x72   : > { %1324 = vmatpush3.bf16.msra.mxu0 %v1519_v8 }
  0x75   : > { %1326 = vmatmul.mubr.bf16.vlgmr.msra.gmra.mrb[0].mxu0 %v1828_v9 }
  0x76   : > { %1329 = vmatprep.mubr.bf16.mxu0 %v1831_v10 }
  0x7d   : > { %1330 = vmatmul.mubr.bf16.gmra.mrb[4].mxu0 %v1836_v11 }
  0x7e   : > { %1333 = vmatprep.mubr.bf16.mxu0 %v1839_v12 }
  0x85   : > { %1334 = vmatmul.mubr.bf16.gmra.mrb[8].mxu0 %v1844_v13 }
  0x86   : > { %1337 = vmatprep.mubr.bf16.mxu0 %v1847_v14 }
  0x8d   : > { %1338 = vmatmul.mubr.bf16.gmra.mrb[12].mxu0 %v1852_v15 }
  0x8e   : > { %1395 = vmatprep.mubr.bf16.mxu0 %v1520_v4 }
 0x148   : > { %v1327_v19 = vpop.f32.mrb[0].mxu0 }
 0x149   : > { %v427_v20 = vpop.f32.mrb[1].mxu0 }
 0x14a   : > { %v1328_v21 = vpop.f32.mrb[2].mxu0 }
 0x14b   : > { %v491_v22 = vpack.c.bf16 %v1328_v21, %v1327_v19  ;;  %v430_v23 = vpop.f32.mrb[3].mxu0 }
 0x14c   : > { %v490_v24 = vpack.c.bf16 %v430_v23, %v427_v20 }
 0x14e   : > { %1343 = vmatprep.mubr.msk.bf16.mxu1 %vm502_vm1, %v490_v24 }
 0x14f   : > { %1344 = vmatmul.mubr.msk.bf16.vlgmr.msra.gmra.mrb[0].mxu1 %vm502_vm1, %v491_v22 }
 0x150   : > { %v1331_v26 = vpop.f32.mrb[4].mxu0  ;;  %1360 = vmatpush3.bf16.msra.mxu1 %v1528_v18 }
 0x151   : > { %v443_v27 = vpop.f32.mrb[5].mxu0  ;;  %1361 = vmatprep.subr.bf16.mxu1 %v1529_v25 }
 0x152   : > { %v1332_v28 = vpop.f32.mrb[6].mxu0 }
 0x153   : > { %v493_v29 = vpack.c.bf16 %v1332_v28, %v1331_v26  ;;  %v446_v30 = vpop.f32.mrb[7].mxu0 }
 0x154   : > { %v492_v31 = vpack.c.bf16 %v446_v30, %v443_v27  ;;  %1362 = vmatpush3.bf16.msra.mxu1 %v1529_v25 }
 0x156   : > { %1347 = vmatprep.mubr.msk.bf16.mxu1 %vm502_vm1, %v492_v31 }
 0x157   : > { %1348 = vmatmul.mubr.msk.bf16.gmra.mrb[4].mxu1 %vm502_vm1, %v493_v29 }
 0x158   : > { %v1335_v32 = vpop.f32.mrb[8].mxu0 }
 0x159   : > { %v459_v33 = vpop.f32.mrb[9].mxu0 }
 0x15a   : > { %v1336_v34 = vpop.f32.mrb[10].mxu0 }
 0x15b   : > { %v495_v35 = vpack.c.bf16 %v1336_v34, %v1335_v32  ;;  %v462_v36 = vpop.f32.mrb[11].mxu0 }
 0x15c   : > { %v494_v37 = vpack.c.bf16 %v462_v36, %v459_v33 }
 0x15e   : > { %1351 = vmatprep.mubr.msk.bf16.mxu1 %vm502_vm1, %v494_v37 }
 0x15f   : > { %1352 = vmatmul.mubr.msk.bf16.gmra.mrb[8].mxu1 %vm502_vm1, %v495_v35 }
 0x160   : > { %v1339_v38 = vpop.f32.mrb[12].mxu0 }
 0x161   : > { %v475_v39 = vpop.f32.mrb[13].mxu0 }
 0x162   : > { %v1340_v40 = vpop.f32.mrb[14].mxu0 }
 0x163   : > { %v497_v41 = vpack.c.bf16 %v1340_v40, %v1339_v38  ;;  %v478_v42 = vpop.f32.mrb[15].mxu0 }
 0x164   : > { %v496_v43 = vpack.c.bf16 %v478_v42, %v475_v39 }
 0x166   : > { %1355 = vmatprep.mubr.msk.bf16.mxu1 %vm502_vm1, %v496_v43 }
 0x167   : > { %1356 = vmatmul.mubr.msk.bf16.gmra.mrb[12].mxu1 %vm502_vm1, %v497_v41 }
 0x222   : > { %v1345_v45 = vpop.f32.mrb[0].mxu1 }
 0x223   : > { %v574_v46 = vadd.f32 %v1345_v45, %v1212_v44  ;;  %v565_v47 = vpop.f32.mrb[1].mxu1 }
 0x224   : > { %v566_v48 = vadd.f32 %v1212_v44, %v565_v47  ;;  %v1346_v49 = vpop.f32.mrb[2].mxu1 }
 0x225   : > { %v577_v50 = vadd.f32 %v1346_v49, %v1212_v44  ;;  %v568_v51 = vpop.f32.mrb[3].mxu1  ;;  %v630_v53 = vmax.f32 %v574_v46, 0.0 }
 0x226   : > { %v569_v52 = vadd.f32 %v1212_v44, %v568_v51  ;;  %v628_v55 = vmax.f32 %v566_v48, 0.0 }
 0x227   : > { %v631_v54 = vmax.f32 %v577_v50, 0.0 }
 0x228   : > { %v629_v56 = vmax.f32 %v569_v52, 0.0 }
 0x229   : > { %v645_v57 = vpack.c.bf16 %v631_v54, %v630_v53 }
 0x22a   : > { %v644_v58 = vpack.c.bf16 %v629_v56, %v628_v55  ;;  %v1349_v59 = vpop.f32.mrb[4].mxu1 }
 0x22b   : > { %v590_v60 = vadd.f32 %v1349_v59, %v1212_v44  ;;  %v581_v61 = vpop.f32.mrb[5].mxu1 }
 0x22c   : > { %v582_v62 = vadd.f32 %v1212_v44, %v581_v61  ;;  %v1350_v63 = vpop.f32.mrb[6].mxu1  ;;  %1363 = vmatprep.mubr.msk.bf16.mxu1 %vm664_vm2, %v644_v58 }
 0x22d   : > { %v593_v0 = vadd.f32 %v1350_v63, %v1212_v44  ;;  %v584_v1 = vpop.f32.mrb[7].mxu1  ;;  %1364 = vmatmul.mubr.msk.bf16.vlgmr.msra.gmra.mrb[16].mxu1 %vm664_vm2, %v645_v57  ;;  %v634_v3 = vmax.f32 %v590_v60, 0.0 }
 0x22e   : > { %v585_v2 = vadd.f32 %v1212_v44, %v584_v1  ;;  %v632_v5 = vmax.f32 %v582_v62, 0.0 }
 0x22f   : > { %v635_v4 = vmax.f32 %v593_v0, 0.0 }
 0x230   : > { %v633_v6 = vmax.f32 %v585_v2, 0.0 }
 0x231   : > { %v647_v7 = vpack.c.bf16 %v635_v4, %v634_v3  ;;  %v1667_v4 = vmov 0.0  }
 0x232   : > { %v646_v8 = vpack.c.bf16 %v633_v6, %v632_v5  ;;  %v1353_v16 = vpop.f32.mrb[8].mxu1  ;;  %1411 = vmatprep.subr.bf16.mxu1 %v1667_v4 }
 0x233   : > { %v606_v17 = vadd.f32 %v1353_v16, %v1212_v44  ;;  %v597_v18 = vpop.f32.mrb[9].mxu1 }
 0x234   : > { %v598_v19 = vadd.f32 %v1212_v44, %v597_v18  ;;  %v1354_v20 = vpop.f32.mrb[10].mxu1  ;;  %1367 = vmatprep.mubr.msk.bf16.mxu1 %vm664_vm2, %v646_v8 }
 0x235   : > { %v609_v21 = vadd.f32 %v1354_v20, %v1212_v44  ;;  %v600_v22 = vpop.f32.mrb[11].mxu1  ;;  %1368 = vmatmul.mubr.msk.bf16.gmra.mrb[20].mxu1 %vm664_vm2, %v647_v7  ;;  %v638_v24 = vmax.f32 %v606_v17, 0.0 }
 0x236   : > { %v601_v23 = vadd.f32 %v1212_v44, %v600_v22  ;;  %v636_v26 = vmax.f32 %v598_v19, 0.0 }
 0x237   : > { %v639_v25 = vmax.f32 %v609_v21, 0.0 }
 0x238   : > { %v637_v27 = vmax.f32 %v601_v23, 0.0 }
 0x239   : > { %v649_v28 = vpack.c.bf16 %v639_v25, %v638_v24 }
 0x23a   : > { %v648_v29 = vpack.c.bf16 %v637_v27, %v636_v26  ;;  %v1357_v30 = vpop.f32.mrb[12].mxu1 }
 0x23b   : > { %v622_v31 = vadd.f32 %v1357_v30, %v1212_v44  ;;  %v613_v32 = vpop.f32.mrb[13].mxu1 }
 0x23c   : > { %v614_v33 = vadd.f32 %v1212_v44, %v613_v32  ;;  %v1358_v34 = vpop.f32.mrb[14].mxu1  ;;  %1371 = vmatprep.mubr.msk.bf16.mxu1 %vm664_vm2, %v648_v29 }
 0x23d   : > { %v625_v35 = vadd.f32 %v1358_v34, %v1212_v44  ;;  %v616_v36 = vpop.f32.mrb[15].mxu1  ;;  %1372 = vmatmul.mubr.msk.bf16.gmra.mrb[24].mxu1 %vm664_vm2, %v649_v28  ;;  %v642_v38 = vmax.f32 %v622_v31, 0.0 }
 0x23e   : > { %v617_v37 = vadd.f32 %v1212_v44, %v616_v36  ;;  %v640_v40 = vmax.f32 %v614_v33, 0.0 }
 0x23f   : > { %v643_v39 = vmax.f32 %v625_v35, 0.0 }
 0x240   : > { %v641_v41 = vmax.f32 %v617_v37, 0.0 }
 0x241   : > { %v651_v42 = vpack.c.bf16 %v643_v39, %v642_v38 }
 0x242   : > { %v650_v43 = vpack.c.bf16 %v641_v41, %v640_v40 }
 0x244   : > { %1375 = vmatprep.mubr.msk.bf16.mxu1 %vm664_vm2, %v650_v43 }
 0x245   : > { %1376 = vmatmul.mubr.msk.bf16.gmra.mrb[28].mxu1 %vm664_vm2, %v651_v42 }
 0x246   : > { %1427 = vmatprep.mubr.msk.bf16.mxu1 %vm1668_vm3, %v1667_v4 }
 0x300   : > { %v1365_v45 = vpop.f32.mrb[16].mxu1 }
 0x301   : > { %v723_v46 = vpop.f32.mrb[17].mxu1 }
 0x302   : > { %v1366_v47 = vpop.f32.mrb[18].mxu1 }
 0x303   : > { %v787_v48 = vpack.c.bf16 %v1366_v47, %v1365_v45  ;;  %v726_v49 = vpop.f32.mrb[19].mxu1 }
 0x304   : > { %v786_v50 = vpack.c.bf16 %v726_v49, %v723_v46 }
 0x306   : > { %1379 = vmatprep.subr.bf16.mxu0 %v786_v50 }
 0x307   : > { %1380 = vmatpush3.bf16.msra.mxu0 %v786_v50 }
 0x308   : > { %v1369_v51 = vpop.f32.mrb[20].mxu1  ;;  %1381 = vmatprep.subr.bf16.mxu0 %v787_v48 }
 0x309   : > { %v739_v44 = vpop.f32.mrb[21].mxu1 }
 0x30a   : > { %v1370_v52 = vpop.f32.mrb[22].mxu1 }
 0x30b   : > { %v789_v53 = vpack.c.bf16 %v1370_v52, %v1369_v51  ;;  %v742_v54 = vpop.f32.mrb[23].mxu1  ;;  %1382 = vmatpush3.bf16.msra.mxu0 %v787_v48 }
 0x30c   : > { %v788_v55 = vpack.c.bf16 %v742_v54, %v739_v44 }
 0x30e   : > { %1383 = vmatprep.subr.bf16.mxu0 %v788_v55 }
 0x30f   : > { %1384 = vmatpush3.bf16.msra.mxu0 %v788_v55 }
 0x310   : > { %v1373_v56 = vpop.f32.mrb[24].mxu1  ;;  %1385 = vmatprep.subr.bf16.mxu0 %v789_v53 }
 0x311   : > { %v755_v57 = vpop.f32.mrb[25].mxu1 }
 0x312   : > { %v1374_v58 = vpop.f32.mrb[26].mxu1 }
 0x313   : > { %v791_v59 = vpack.c.bf16 %v1374_v58, %v1373_v56  ;;  %v758_v60 = vpop.f32.mrb[27].mxu1  ;;  %1386 = vmatpush3.bf16.msra.mxu0 %v789_v53 }
 0x314   : > { %v790_v61 = vpack.c.bf16 %v758_v60, %v755_v57 }
 0x316   : > { %1387 = vmatprep.subr.bf16.mxu0 %v790_v61 }
 0x317   : > { %1388 = vmatpush3.bf16.msra.mxu0 %v790_v61 }
 0x318   : > { %v1377_v62 = vpop.f32.mrb[28].mxu1  ;;  %1389 = vmatprep.subr.bf16.mxu0 %v791_v59 }
 0x319   : > { %v771_v63 = vpop.f32.mrb[29].mxu1 }
 0x31a   : > { %v1378_v0 = vpop.f32.mrb[30].mxu1 }
 0x31b   : > { %v793_v1 = vpack.c.bf16 %v1378_v0, %v1377_v62  ;;  %v774_v2 = vpop.f32.mrb[31].mxu1  ;;  %1390 = vmatpush3.bf16.msra.mxu0 %v791_v59  ;;  %v292_v62 = vld [vmem:[#allocation2 + $0x30] sm:$0xf] }
 0x31c   : > { %v792_v3 = vpack.c.bf16 %v774_v2, %v771_v63  ;;  %v1530_v63 = vld [vmem:[#allocation2 + $0x18] sm:$0xff]  }
 0x31e   : > { %1391 = vmatprep.subr.bf16.mxu0 %v792_v3 }
 0x31f   : > { %1392 = vmatpush3.bf16.msra.mxu0 %v792_v3 }
 0x320   : > { %1393 = vmatprep.subr.bf16.mxu0 %v793_v1 }
 0x323   : > { %1394 = vmatpush3.bf16.msra.mxu0 %v793_v1 }
 0x326   : > { %1396 = vmatmul.mubr.bf16.vlgmr.msra.gmra.mrb[16].mxu0 %v1828_v9  ;;  %v1231_v9 = vld [vmem:[#allocation5 + $0x8] ss:$0 sm:$0xff] }
 0x327   : > { %1399 = vmatprep.mubr.bf16.mxu0 %v1831_v10 }
 0x32e   : > { %1400 = vmatmul.mubr.bf16.gmra.mrb[20].mxu0 %v1836_v11 }
 0x32f   : > { %1403 = vmatprep.mubr.bf16.mxu0 %v1839_v12 }
 0x336   : > { %1404 = vmatmul.mubr.bf16.gmra.mrb[24].mxu0 %v1844_v13 }
 0x337   : > { %1407 = vmatprep.mubr.bf16.mxu0 %v1847_v14 }
 0x33e   : > { %1408 = vmatmul.mubr.bf16.gmra.mrb[28].mxu0 %v1852_v15 }
 0x3f9   : > { %v1397_v5 = vpop.f32.mrb[16].mxu0 }
 0x3fa   : > { %v841_v10 = vadd.f32 %v1397_v5, %v1231_v9  ;;  %v832_v6 = vpop.f32.mrb[17].mxu0  ;;  %v1531_v5 = vld [vmem:[#allocation2 + $0x20] sm:$0xff]  }
 0x3fb   : > { %v833_v11 = vadd.f32 %v1231_v9, %v832_v6  ;;  %v1398_v7 = vpop.f32.mrb[18].mxu0  ;;  %v1232_v6 = vld [vmem:[#allocation5 + $0x10] ss:$0 sm:$0xff] }
 0x3fc   : > { %v844_v12 = vadd.f32 %v1398_v7, %v1231_v9  ;;  %v835_v8 = vpop.f32.mrb[19].mxu0  ;;  %v897_v16 = vmax.f32 %v841_v10, 0.0  ;;  %v1532_v10 = vld [vmem:[#allocation2 + $0x28] sm:$0xff]  }
 0x3fd   : > { %v836_v13 = vadd.f32 %v1231_v9, %v835_v8  ;;  %v895_v17 = vmax.f32 %v833_v11, 0.0 }
 0x3fe   : > { %v898_v14 = vmax.f32 %v844_v12, 0.0 }
 0x3ff   : > { %v896_v15 = vmax.f32 %v836_v13, 0.0 }
 0x400   : > { %v912_v18 = vpack.c.bf16 %v898_v14, %v897_v16 }
 0x401   : > { %v911_v19 = vpack.c.bf16 %v896_v15, %v895_v17  ;;  %v1401_v20 = vpop.f32.mrb[20].mxu0  ;;  %v1235_v17 = vld [vmem:[#allocation5 + $0x18] ss:$0 sm:$0xff] }
 0x402   : > { %v857_v21 = vadd.f32 %v1401_v20, %v1231_v9  ;;  %v848_v22 = vpop.f32.mrb[21].mxu0 }
 0x403   : > { %v849_v23 = vadd.f32 %v1231_v9, %v848_v22  ;;  %v1402_v24 = vpop.f32.mrb[22].mxu0  ;;  %1412 = vmatpush3.bf16.msra.mxu1 %v911_v19 }
 0x404   : > { %v860_v25 = vadd.f32 %v1402_v24, %v1231_v9  ;;  %v851_v26 = vpop.f32.mrb[23].mxu0  ;;  %1413 = vmatprep.subr.bf16.mxu1 %v1667_v4  ;;  %v901_v28 = vmax.f32 %v857_v21, 0.0 }
 0x405   : > { %v852_v27 = vadd.f32 %v1231_v9, %v851_v26  ;;  %v899_v30 = vmax.f32 %v849_v23, 0.0 }
 0x406   : > { %v902_v29 = vmax.f32 %v860_v25, 0.0 }
 0x407   : > { %v900_v31 = vmax.f32 %v852_v27, 0.0  ;;  %1414 = vmatpush3.bf16.msra.mxu1 %v912_v18 }
 0x408   : > { %v914_v32 = vpack.c.bf16 %v902_v29, %v901_v28  ;;  %1415 = vmatprep.subr.bf16.mxu1 %v1667_v4 }
 0x409   : > { %v913_v33 = vpack.c.bf16 %v900_v31, %v899_v30  ;;  %v1405_v34 = vpop.f32.mrb[24].mxu0 }
 0x40a   : > { %v873_v35 = vadd.f32 %v1405_v34, %v1231_v9  ;;  %v864_v36 = vpop.f32.mrb[25].mxu0 }
 0x40b   : > { %v865_v37 = vadd.f32 %v1231_v9, %v864_v36  ;;  %v1406_v38 = vpop.f32.mrb[26].mxu0  ;;  %1416 = vmatpush3.bf16.msra.mxu1 %v913_v33 }
 0x40c   : > { %v876_v39 = vadd.f32 %v1406_v38, %v1231_v9  ;;  %v867_v40 = vpop.f32.mrb[27].mxu0  ;;  %1417 = vmatprep.subr.bf16.mxu1 %v1667_v4  ;;  %v905_v42 = vmax.f32 %v873_v35, 0.0 }
 0x40d   : > { %v868_v41 = vadd.f32 %v1231_v9, %v867_v40  ;;  %v903_v45 = vmax.f32 %v865_v37, 0.0 }
 0x40e   : > { %v906_v43 = vmax.f32 %v876_v39, 0.0 }
 0x40f   : > { %v904_v46 = vmax.f32 %v868_v41, 0.0  ;;  %1418 = vmatpush3.bf16.msra.mxu1 %v914_v32 }
 0x410   : > { %v916_v47 = vpack.c.bf16 %v906_v43, %v905_v42  ;;  %1419 = vmatprep.subr.bf16.mxu1 %v1667_v4 }
 0x411   : > { %v915_v48 = vpack.c.bf16 %v904_v46, %v903_v45  ;;  %v1409_v49 = vpop.f32.mrb[28].mxu0 }
 0x412   : > { %v889_v50 = vadd.f32 %v1409_v49, %v1231_v9  ;;  %v880_v51 = vpop.f32.mrb[29].mxu0 }
 0x413   : > { %v881_v44 = vadd.f32 %v1231_v9, %v880_v51  ;;  %v1410_v52 = vpop.f32.mrb[30].mxu0  ;;  %1420 = vmatpush3.bf16.msra.mxu1 %v915_v48 }
 0x414   : > { %v892_v53 = vadd.f32 %v1410_v52, %v1231_v9  ;;  %v883_v54 = vpop.f32.mrb[31].mxu0  ;;  %1421 = vmatprep.subr.bf16.mxu1 %v1667_v4  ;;  %v909_v56 = vmax.f32 %v889_v50, 0.0 }
 0x415   : > { %v884_v55 = vadd.f32 %v1231_v9, %v883_v54  ;;  %v907_v58 = vmax.f32 %v881_v44, 0.0 }
 0x416   : > { %v910_v57 = vmax.f32 %v892_v53, 0.0 }
 0x417   : > { %v908_v59 = vmax.f32 %v884_v55, 0.0  ;;  %1422 = vmatpush3.bf16.msra.mxu1 %v916_v47 }
 0x418   : > { %v918_v60 = vpack.c.bf16 %v910_v57, %v909_v56  ;;  %1423 = vmatprep.subr.bf16.mxu1 %v1667_v4 }
 0x419   : > { %v917_v61 = vpack.c.bf16 %v908_v59, %v907_v58 }
 0x41b   : > { %1424 = vmatpush3.bf16.msra.mxu1 %v917_v61 }
 0x41c   : > { %1425 = vmatprep.subr.bf16.mxu1 %v1667_v4 }
 0x41f   : > { %1426 = vmatpush3.bf16.msra.mxu1 %v918_v60 }
 0x420   : > { %1431 = vmatprep.subr.bf16.mxu1 %v1667_v4 }
 0x422   : > { %1428 = vmatmul.mubr.bf16.vlgmr.msra.gmra.mrb[32].mxu1 %v292_v62 }
 0x423   : > { %1432 = vmatpush3.bf16.msra.mxu1 %v1530_v63  ;;  %1433 = vmatprep.mubr.msk.bf16.mxu1 %vm1668_vm3, %v1667_v4 }
 0x424   : > { %1437 = vmatprep.subr.bf16.mxu1 %v1667_v4 }
 0x4f5   : > { %v953_v0 = vpop.f32.mrb[32].mxu1 }
 0x4f6   : > { %v959_v1 = vpack.c.bf16 %v953_v0, %v953_v0  ;;  %v1429_v2 = vpop.f32.mrb[33].mxu1 }
 0x4f7   : > { %v956_v3 = vpop.f32.mrb[34].mxu1 }
 0x4f8   : > { %v1430_v9 = vpop.f32.mrb[35].mxu1  ;;  %1434 = vmatmul.mubr.msk.bf16.vlgmr.msra.gmra.mrb[36].mxu1 %vm970_vm4, %v959_v1 }
 0x4f9   : > { %1441 = vmatprep.mubr.msk.bf16.mxu1 %vm1668_vm3, %v1667_v4  ;;  %1438 = vmatpush3.bf16.msra.mxu1 %v1531_v5 }
 0x4fa   : > { %1439 = vmatprep.subr.bf16.mxu1 %v1667_v4 }
 0x4fd   : > { %1440 = vmatpush3.bf16.msra.mxu1 %v1532_v10 }
 0x5cb   : > { %v1008_v11 = vpop.f32.mrb[36].mxu1 }
 0x5cc   : > { %v1009_v7 = vadd.f32 %v1232_v6, %v1008_v11  ;;  %v1435_v12 = vpop.f32.mrb[37].mxu1 }
 0x5cd   : > { %v1011_v8 = vpop.f32.mrb[38].mxu1 }
 0x5ce   : > { %v1014_v13 = vmax.f32 %v1009_v7, 0.0  ;;  %v1436_v16 = vpop.f32.mrb[39].mxu1 }
 0x5d0   : > { %v1015_v14 = vpack.c.bf16 %v1014_v13, %v1014_v13 }
 0x5d2   : > { %1442 = vmatmul.mubr.msk.bf16.vlgmr.msra.gmra.mrb[40].mxu1 %vm664_vm2, %v1015_v14 }
 0x6a5   : > { %v1069_v4 = vpop.f32.mrb[40].mxu1 }
 0x6a6   : > { %v1070_v15 = vadd.f32 %v1235_v17, %v1069_v4  ;;  %v1443_v18 = vpop.f32.mrb[41].mxu1 }
 0x6a7   : > { %v1072_v19 = vpop.f32.mrb[42].mxu1 }
 0x6a8   : > { %1075 = vst [vmem:[%s236_s13] sm:$0xff] %v1070_v15  ;;  %v1444_v20 = vpop.f32.mrb[43].mxu1 }
 0x6a9   : > { %1602 = shalt.err (!%p1599_p13)
}
 0x6aa   : > { %s1603_s5 = scalar_lea.hbm %s1901_s30, 128  ;;  %s1607_s9 = scalar_lea.hbm %s1947_s4, 256 }
 0x6ab   : > { %p1604_p0 = scmp.ne.s32.totalorder %s1901_s30, %s1603_s5  ;;  %p1608_p9 = scmp.lt.u32.totalorder %s1901_s30, %s1947_s4 }
 0x6ac   : > { %p1609_p12 = scmp.lt.u32.totalorder %s1607_s9, %s1603_s5  ;;  %p1611_p1 = scmp.lt.u32.totalorder %s1603_s5, %s1901_s30 }
 0x6ad   : > { %p1605_p5 = pnand %p1604_p0, %p1960_p2 }
 0x6ae   : > { %p1610_p10 = por %p1609_p12, %p1608_p9 }
 0x6af   : > { %p1606_p6 = pneg %p1605_p5 }
 0x6b0   : > { %p1612_p3 = por %p1611_p1, %p1610_p10 }
 0x6b2   : > { %p1613_p4 = pnand %p1612_p3, %p1606_p6 }
 0x6b4   : > { %1616 = shalt.err (!%p1613_p4)
}
 0x6b5   : > { %1454 = dma.vmem_to_hbm [thread:$0]  (%p1960_p2), %s1903_s14, 128, %s1901_s30, %s1077_s27  }
 0x6b6 PF: > { %p1471_p7 = scmp.ge.s32.totalorder %s1659_s18, 2  ;;  %s1102_s12 = sand.u32 1, %s1647_s15  }
 0x6b7   : > { %p1961_p8 = scmp.ne.s32.totalorder %s1952_s26, 0  ;;  %s1103_s29 = scalar_lea.sflag [#allocation4], %s1102_s12 }
 0x6b9   : > { %p1464_p11 = pnand %p1471_p7, %p1961_p8 }
 0x6bb   : > { %1642 = dma.done.wait (!%p1464_p11), %s1103_s29, 128  }
 0x6bc   : > { %1644 = vsyncadd (!%p1464_p11), %s1103_s29, 4294967168  ;;  %p16_p13 = scmp.ge.s32.totalorder %s1720_s21, 4   ;;  %s1962_s15 = smov %s1651_s16 }
 0x6bd   : > { %s1963_s16 = smov %s1655_s17  ;;  %s1964_s17 = smov %s1731_s24 }
 0x6be   : > { %s1965_s18 = smov %s1720_s21  ;;  %18 = sbr.rel (!%p16_p13) target bundleno = 5 (0x5), region = 83 }
 0x6c5   :  { %1108 = vsyncpa [#allocation3], 1 }
 0x6c6   :  { %1110 = vsyncpa [#allocation3 + $0x1], 1 }
 0x6c7   :  { %1111 = vsyncpa [#allocation6], 1 }
 0x6c8   :  { %1112 = vsyncpa [#allocation4], 1 }
 0x6c9   :  { %1114 = vsyncpa [#allocation4 + $0x1], 1 }

</bundles_post_ra>
